<compile_context>
chip_gen: v7x
topology: tpu7x:2x2x1
jax: 0.10.0
libtpu: 0.0.40
codegen_flags: <defaults>
</compile_context>

<pallas_src>
import functools

import jax
import jax.numpy as jnp
from jax import lax
from jax.experimental import pallas as pl
from jax.experimental.pallas import tpu as pltpu


LRELU_SLOPE = 0.2
BN_EPS = 1e-5
LANE = 128                        # pad C_out to a multiple of this (lane-dense)
TM_TARGET = 512                   # target rows per M-tile
TK_MAX = 2048                     # K-tile cap (K-tiled above this)
VMEM_BUDGET = 12 * 1024 * 1024    # conservative: fits v5e's 16 MiB scoped default


def _round_up(x, m):
    return ((x + m - 1) // m) * m


def _cdiv(a, b):
    return -(-a // b)


# ----------------------------------------------------------------------------
# Pallas kernels
# ----------------------------------------------------------------------------
def _leaky_relu(y, slope):
    return jnp.maximum(y, 0.0) + slope * jnp.minimum(y, 0.0)


def _conv_bn_stats_kernel(p_ref, w_ref, y_ref, sum_ref, sq_ref, acc_ref):
    """K-tiled (tm,tk)x(tk,Cp) matmul with f32 accumulator.  On the last K
    step: write the bf16 conv output plus per-M-tile partial sum and
    sum-of-squares (8-row lane-dense blocks, computed from the f32 acc)."""
    k = pl.program_id(1)

    @pl.when(k == 0)
    def _():
        acc_ref[...] = jnp.zeros_like(acc_ref)

    acc_ref[...] += jnp.dot(p_ref[...], w_ref[...],
                            preferred_element_type=jnp.float32)

    @pl.when(k == pl.num_programs(1) - 1)
    def _():
        y = acc_ref[...]
        y_ref[...] = y.astype(y_ref.dtype)
        # Zero-padded M rows have all-zero patches -> y == 0 there, so they
        # contribute nothing to either sum; only the divisor (true M) matters.
        sum_ref[...] = jnp.broadcast_to(
            jnp.sum(y, axis=0, keepdims=True), sum_ref.shape)
        sq_ref[...] = jnp.broadcast_to(
            jnp.sum(y * y, axis=0, keepdims=True), sq_ref.shape)


def _conv_lrelu_kernel(p_ref, w_ref, o_ref, acc_ref, *, slope):
    """Layer-0 path: K-tiled matmul + LeakyReLU, no BN / no affine streams."""
    k = pl.program_id(1)

    @pl.when(k == 0)
    def _():
        acc_ref[...] = jnp.zeros_like(acc_ref)

    acc_ref[...] += jnp.dot(p_ref[...], w_ref[...],
                            preferred_element_type=jnp.float32)

    @pl.when(k == pl.num_programs(1) - 1)
    def _():
        o_ref[...] = _leaky_relu(acc_ref[...], slope).astype(o_ref.dtype)


def _affine_lrelu_kernel(y_ref, s_ref, b_ref, o_ref, *, slope):
    """Folded BN (per-channel scale/shift) + LeakyReLU; bf16 in -> bf16 out."""
    y = y_ref[...].astype(jnp.float32) * s_ref[...] + b_ref[...]
    o_ref[...] = _leaky_relu(y, slope).astype(o_ref.dtype)


def _head_kernel(x_ref, w_ref, o_ref):
    """Flatten features -> Linear (no bias, lane-padded to 128) + Sigmoid."""
    z = jnp.dot(x_ref[...], w_ref[...], preferred_element_type=jnp.float32)
    o_ref[...] = jax.nn.sigmoid(z)


_VMEM_FULL = pl.BlockSpec(memory_space=pltpu.MemorySpace.VMEM)


# ----------------------------------------------------------------------------
# Tiling policy
# ----------------------------------------------------------------------------
def _pick_tiles(m, k, cp):
    """Choose (tm, tk, n_m, n_k) under an explicit VMEM budget.

    tm is 16-row aligned (bf16 sublane packing), sized so M-padding is at most
    one tile's worth of slack, and forced to >= 2 tiles when M allows so the
    'parallel' M axis keeps both v7x TensorCores busy."""
    tk = k if k <= TK_MAX else next(
        (t for t in (2048, 1024, 512, 256, 128) if k % t == 0), k)

    n_m = max(1, _cdiv(m, TM_TARGET))
    if n_m == 1 and m >= 32:
        n_m = 2
    tm = _round_up(_cdiv(m, n_m), 16)

    def footprint(tm_):
        return (2 * tm_ * tk * 2        # patch blocks (double-buffered, bf16)
                + 2 * tk * cp * 2       # weight blocks (double-buffered, bf16)
                + 2 * tm_ * cp * 2      # bf16 output blocks (double-buffered)
                + tm_ * cp * 4          # f32 accumulator scratch
                + 4 * 8 * cp * 4)       # partial-stats output blocks

    while tm > 16 and footprint(tm) > VMEM_BUDGET:
        tm = _round_up(tm // 2, 16)

    n_m = _cdiv(m, tm)
    n_k = _cdiv(k, tk)
    return tm, tk, n_m, n_k


# ----------------------------------------------------------------------------
# Pallas wrappers
# ----------------------------------------------------------------------------
def _conv_bn_stats(patches, w_mat, tm, tk, n_m, n_k):
    mp, _ = patches.shape
    cp = w_mat.shape[1]
    return pl.pallas_call(
        _conv_bn_stats_kernel,
        out_shape=(
            jax.ShapeDtypeStruct((mp, cp), jnp.bfloat16),
            jax.ShapeDtypeStruct((n_m * 8, cp), jnp.float32),
            jax.ShapeDtypeStruct((n_m * 8, cp), jnp.float32),
        ),
        grid=(n_m, n_k),
        in_specs=[
            pl.BlockSpec((tm, tk), lambda i, j: (i, j)),
            pl.BlockSpec((tk, cp), lambda i, j: (j, 0)),
        ],
        out_specs=[
            pl.BlockSpec((tm, cp), lambda i, j: (i, 0)),
            pl.BlockSpec((8, cp), lambda i, j: (i, 0)),
            pl.BlockSpec((8, cp), lambda i, j: (i, 0)),
        ],
        scratch_shapes=[pltpu.VMEM((tm, cp), jnp.float32)],
        compiler_params=pltpu.CompilerParams(
            dimension_semantics=("parallel", "arbitrary")),
    )(patches, w_mat)


def _conv_lrelu(patches, w_mat, tm, tk, n_m, n_k):
    mp, _ = patches.shape
    cp = w_mat.shape[1]
    kernel = functools.partial(_conv_lrelu_kernel, slope=LRELU_SLOPE)
    return pl.pallas_call(
        kernel,
        out_shape=jax.ShapeDtypeStruct((mp, cp), jnp.bfloat16),
        grid=(n_m, n_k),
        in_specs=[
            pl.BlockSpec((tm, tk), lambda i, j: (i, j)),
            pl.BlockSpec((tk, cp), lambda i, j: (j, 0)),
        ],
        out_specs=pl.BlockSpec((tm, cp), lambda i, j: (i, 0)),
        scratch_shapes=[pltpu.VMEM((tm, cp), jnp.float32)],
        compiler_params=pltpu.CompilerParams(
            dimension_semantics=("parallel", "arbitrary")),
    )(patches, w_mat)


def _affine_lrelu(y, scale, shift, tm, n_m):
    mp, cp = y.shape
    kernel = functools.partial(_affine_lrelu_kernel, slope=LRELU_SLOPE)
    return pl.pallas_call(
        kernel,
        out_shape=jax.ShapeDtypeStruct((mp, cp), jnp.bfloat16),
        grid=(n_m,),
        in_specs=[
            pl.BlockSpec((tm, cp), lambda i: (i, 0)),
            pl.BlockSpec((1, cp), lambda i: (0, 0)),
            pl.BlockSpec((1, cp), lambda i: (0, 0)),
        ],
        out_specs=pl.BlockSpec((tm, cp), lambda i: (i, 0)),
        compiler_params=pltpu.CompilerParams(
            dimension_semantics=("parallel",)),
    )(y, scale, shift)


def _predict_head(x_flat, w_lin_p):
    n = x_flat.shape[0]
    cp = w_lin_p.shape[1]
    out = pl.pallas_call(
        _head_kernel,
        out_shape=jax.ShapeDtypeStruct((n, cp), jnp.float32),
        in_specs=[_VMEM_FULL, _VMEM_FULL],
        out_specs=_VMEM_FULL,
    )(x_flat, w_lin_p)
    return out[:, :1]


# ----------------------------------------------------------------------------
# XLA glue: im2col for Conv2d(kernel=4, stride=2, padding=1), bf16
# ----------------------------------------------------------------------------
def im2col(x_nhwc, k=4, stride=2, pad=1):
    # TODO(synk): fuse im2col into the Pallas matmul (per-(kh,kw) strided
    # shifted loads inside the kernel) to remove the ~16x patch HBM traffic.
    n, h, w, c = x_nhwc.shape
    ho = (h + 2 * pad - k) // stride + 1
    wo = (w + 2 * pad - k) // stride + 1
    xp = jnp.pad(x_nhwc, ((0, 0), (pad, pad), (pad, pad), (0, 0)))
    cols = []
    for kh in range(k):
        for kw in range(k):
            cols.append(
                xp[:, kh: kh + stride * ho: stride, kw: kw + stride * wo: stride, :]
            )  # (N, Ho, Wo, C)
    patches = jnp.stack(cols, axis=3)  # (N, Ho, Wo, k*k, C); K-order = (kh, kw, c)
    return patches.reshape(n * ho * wo, k * k * c), ho, wo


# ----------------------------------------------------------------------------
# Forward pass
# ----------------------------------------------------------------------------
def _conv_layer(x_nhwc, layer, use_bn):
    n = x_nhwc.shape[0]
    w_mat_p = layer["w"]            # (16*C_in, Cp) bf16, C_out padded to lanes
    gamma = layer["gamma"]          # (C_out,) f32
    beta = layer["beta"]            # (C_out,) f32
    c_out = gamma.shape[0]
    kdim, cp = w_mat_p.shape

    patches, ho, wo = im2col(x_nhwc)             # (m, 16*C_in) bf16
    m = patches.shape[0]
    tm, tk, n_m, n_k = _pick_tiles(m, kdim, cp)
    mp = n_m * tm
    if mp != m:
        patches = jnp.pad(patches, ((0, mp - m), (0, 0)))

    if use_bn:
        # Pass 1: tiled conv matmul -> bf16 y + per-tile partial stats (f32).
        y, sums, sq = _conv_bn_stats(patches, w_mat_p, tm, tk, n_m, n_k)
        # Finish the tiny (n_m, Cp) reductions in XLA; training-mode (biased)
        # batch stats over the true m rows, folded into scale/shift.
        total = jnp.sum(sums.reshape(n_m, 8, cp)[:, 0, :], axis=0)
        total_sq = jnp.sum(sq.reshape(n_m, 8, cp)[:, 0, :], axis=0)
        mean = total / m
        var = jnp.maximum(total_sq / m - mean * mean, 0.0)
        inv = lax.rsqrt(var + BN_EPS)
        gamma_p = jnp.pad(gamma, (0, cp - c_out))
        beta_p = jnp.pad(beta, (0, cp - c_out))
        scale = (gamma_p * inv).reshape(1, cp)
        shift = (beta_p - mean * gamma_p * inv).reshape(1, cp)
        # Pass 2: tiled scale/shift + LeakyReLU, bf16 in / bf16 out.
        act = _affine_lrelu(y, scale, shift, tm, n_m)
    else:
        # Layer 0: dedicated matmul + LeakyReLU kernel (no affine streams).
        act = _conv_lrelu(patches, w_mat_p, tm, tk, n_m, n_k)

    act = act[:m, :c_out]                        # drop M- and channel-padding
    return act.reshape(n, ho, wo, c_out)


def discriminator_forward(params, x_nchw):
    # NCHW (PyTorch) -> NHWC, bf16 activations between layers.
    x = jnp.transpose(x_nchw, (0, 2, 3, 1)).astype(jnp.bfloat16)
    n = x.shape[0]
    for i, layer in enumerate(params["layers"]):
        x = _conv_layer(x, layer, use_bn=(i != 0))
    # Flatten in PyTorch NCHW order; skip the transpose when spatial is 1x1.
    if x.shape[1] == 1 and x.shape[2] == 1:
        x_flat = x.reshape(n, -1)
    else:
        x_flat = jnp.transpose(x, (0, 3, 1, 2)).reshape(n, -1)
    return _predict_head(x_flat.astype(jnp.bfloat16), params["lin_w"])  # (N, 1) f32


# ----------------------------------------------------------------------------
# Parameter init (weight re-layout hoisted out of the forward path)
# ----------------------------------------------------------------------------
def init_params(key, img_channels, hidden_channels, img_size):
    n_layers = len(hidden_channels)
    chans = [img_channels] + list(hidden_channels)
    layers = []
    for i in range(n_layers):
        c_in, c_out = chans[i], chans[i + 1]
        # NOTE: on v6e/v7x (2x256 MXU) rounding Cp to 256 for C_out > 128 can
        # help; 128 is kept here (optimal for v5e and for these toy sizes).
        cp = _round_up(c_out, LANE)
        key, sub = jax.random.split(key)
        # DCGAN-style N(0, 0.02); PyTorch layout (C_out, C_in, 4, 4), bias=False.
        w = 0.02 * jax.random.normal(sub, (c_out, c_in, 4, 4), jnp.float32)
        # -> (KH, KW, C_in, C_out) to match the im2col K-order, flatten,
        #    pad C_out to a multiple of 128 with zero columns, cast bf16.
        w_mat = jnp.transpose(w, (2, 3, 1, 0)).reshape(16 * c_in, c_out)
        w_mat_p = jnp.pad(w_mat, ((0, 0), (0, cp - c_out))).astype(jnp.bfloat16)
        layers.append({
            "w": w_mat_p,
            # BatchNorm2d default init (weight=1, bias=0); layer 0 ignores them.
            "gamma": jnp.ones((c_out,), jnp.float32),
            "beta": jnp.zeros((c_out,), jnp.float32),
        })
    feat = chans[-1] * (img_size // 2 ** n_layers) ** 2
    key, sub = jax.random.split(key)
    lin = 0.02 * jax.random.normal(sub, (feat, 1), jnp.float32)   # bias=False
    lin_p = jnp.pad(lin, ((0, 0), (0, LANE - 1))).astype(jnp.bfloat16)
    return {"layers": layers, "lin_w": lin_p}


if __name__ == "__main__":
    # Small shapes consistent with the module: img_size % 2**n_layers == 0.
    batch = 2
    img_size = 16
    img_channels = 3
    hidden_channels = [8, 16, 32, 64]

    key = jax.random.PRNGKey(0)
    k_param, k_x = jax.random.split(key)
    params = init_params(k_param, img_channels, hidden_channels, img_size)
    x = jax.random.normal(k_x, (batch, img_channels, img_size, img_size), jnp.float32)

    fwd = jax.jit(discriminator_forward)
    out = fwd(params, x)
    out = jax.block_until_ready(out)
    assert out.shape == (batch, 1)
    assert bool(jnp.all(jnp.isfinite(out)))
    print("KERNEL_OK")
</pallas_src>

<mosaic_0001>
module attributes {stable_mosaic.version = 11 : i64} {
  func.func @_conv_lrelu_kernel(%arg0: i32, %arg1: i32, %arg2: memref<64x48xbf16, #tpu.memory_space<vmem>>, %arg3: memref<48x128xbf16, #tpu.memory_space<vmem>>, %arg4: memref<64x128xbf16, #tpu.memory_space<vmem>>, %arg5: memref<64x128xf32, #tpu.memory_space<vmem>>) attributes {dimension_semantics = [#tpu.dimension_semantics<parallel>, #tpu.dimension_semantics<arbitrary>], iteration_bounds = array<i64: 2, 1>, scalar_prefetch = 0 : i64, scratch_operands = 1 : i64, tpu.core_type = #tpu.core_type<tc>, window_params = [{transform_indices = @transform_0, window_bounds = array<i64: 64, 48>}, {transform_indices = @transform_1, window_bounds = array<i64: 48, 128>}, {transform_indices = @transform_2, window_bounds = array<i64: 64, 128>}]} {
    %c0_i32 = arith.constant 0 : i32
    %0 = arith.cmpi eq, %arg1, %c0_i32 : i32
    %1 = arith.extui %0 : i1 to i32
    %c0_i32_0 = arith.constant 0 : i32
    %2 = arith.cmpi ne, %1, %c0_i32_0 : i32
    scf.if %2 {
      %cst_10 = arith.constant 0.000000e+00 : f32
      %12 = vector.broadcast %cst_10 : f32 to vector<64x128xf32>
      %c0_11 = arith.constant 0 : index
      %c0_12 = arith.constant 0 : index
      %13 = vector.load %arg5[%c0_11, %c0_12] : memref<64x128xf32, #tpu.memory_space<vmem>>, vector<64x128xf32>
      tpu.vector_store %arg5[%c0_11, %c0_12], %12 {strides = array<i32>} : memref<64x128xf32, #tpu.memory_space<vmem>>, vector<64x128xf32>,
    } else {
    }
    %c0 = arith.constant 0 : index
    %c0_1 = arith.constant 0 : index
    %3 = vector.load %arg5[%c0, %c0_1] : memref<64x128xf32, #tpu.memory_space<vmem>>, vector<64x128xf32>
    %c0_2 = arith.constant 0 : index
    %c0_3 = arith.constant 0 : index
    %4 = vector.load %arg2[%c0_2, %c0_3] : memref<64x48xbf16, #tpu.memory_space<vmem>>, vector<64x48xbf16>
    %c0_4 = arith.constant 0 : index
    %c0_5 = arith.constant 0 : index
    %5 = vector.load %arg3[%c0_4, %c0_5] : memref<48x128xbf16, #tpu.memory_space<vmem>>, vector<48x128xbf16>
    %cst = arith.constant dense<0.000000e+00> : vector<64x128xf32>
    %6 = tpu.matmul %4, %5, %cst {dimension_numbers = #tpu.dot_dimension_numbers<[1], [0], [0], [1], [0, 0, 1, 1], [], []>} : vector<64x48xbf16>, vector<48x128xbf16>, vector<64x128xf32> -> vector<64x128xf32>
    %7 = arith.addf %3, %6 : vector<64x128xf32>
    %c0_6 = arith.constant 0 : index
    %c0_7 = arith.constant 0 : index
    %8 = vector.load %arg5[%c0_6, %c0_7] : memref<64x128xf32, #tpu.memory_space<vmem>>, vector<64x128xf32>
    tpu.vector_store %arg5[%c0_6, %c0_7], %7 {strides = array<i32>} : memref<64x128xf32, #tpu.memory_space<vmem>>, vector<64x128xf32>,
    %c0_i32_8 = arith.constant 0 : i32
    %9 = arith.cmpi eq, %arg1, %c0_i32_8 : i32
    %10 = arith.extui %9 : i1 to i32
    %c0_i32_9 = arith.constant 0 : i32
    %11 = arith.cmpi ne, %10, %c0_i32_9 : i32
    scf.if %11 {
      %c0_10 = arith.constant 0 : index
      %c0_11 = arith.constant 0 : index
      %12 = vector.load %arg5[%c0_10, %c0_11] : memref<64x128xf32, #tpu.memory_space<vmem>>, vector<64x128xf32>
      %cst_12 = arith.constant 0.000000e+00 : f32
      %13 = vector.broadcast %cst_12 : f32 to vector<64x128xf32>
      %14 = arith.maximumf %12, %13 : vector<64x128xf32>
      %cst_13 = arith.constant 0.000000e+00 : f32
      %15 = vector.broadcast %cst_13 : f32 to vector<64x128xf32>
      %16 = arith.minimumf %12, %15 : vector<64x128xf32>
      %cst_14 = arith.constant 2.000000e-01 : f32
      %17 = vector.broadcast %cst_14 : f32 to vector<64x128xf32>
      %18 = arith.mulf %17, %16 : vector<64x128xf32>
      %19 = arith.addf %14, %18 : vector<64x128xf32>
      %20 = arith.truncf %19 : vector<64x128xf32> to vector<64x128xbf16>
      %c0_15 = arith.constant 0 : index
      %c0_16 = arith.constant 0 : index
      %21 = vector.load %arg4[%c0_15, %c0_16] : memref<64x128xbf16, #tpu.memory_space<vmem>>, vector<64x128xbf16>
      tpu.vector_store %arg4[%c0_15, %c0_16], %20 {strides = array<i32>} : memref<64x128xbf16, #tpu.memory_space<vmem>>, vector<64x128xbf16>,
    } else {
    }
    return
  }
  func.func @transform_0(%arg0: i32, %arg1: i32) -> (i32, i32) {
    %c0_i32 = arith.constant 0 : i32
    return %arg0, %arg1 : i32, i32
  }
  func.func @transform_1(%arg0: i32, %arg1: i32) -> (i32, i32) {
    %c0_i32 = arith.constant 0 : i32
    %c0_i32_0 = arith.constant 0 : i32
    return %arg1, %c0_i32 : i32, i32
  }
  func.func @transform_2(%arg0: i32, %arg1: i32) -> (i32, i32) {
    %c0_i32 = arith.constant 0 : i32
    %c0_i32_0 = arith.constant 0 : i32
    return %arg0, %c0_i32 : i32, i32
  }
}

module attributes {stable_mosaic.version = 11 : i64} {
  func.func @_affine_lrelu_kernel(%arg0: i32, %arg1: memref<16x128xbf16, #tpu.memory_space<vmem>>, %arg2: memref<1x128xf32, #tpu.memory_space<vmem>>, %arg3: memref<1x128xf32, #tpu.memory_space<vmem>>, %arg4: memref<16x128xbf16, #tpu.memory_space<vmem>>) attributes {dimension_semantics = [#tpu.dimension_semantics<parallel>], iteration_bounds = array<i64: 2>, scalar_prefetch = 0 : i64, scratch_operands = 0 : i64, tpu.core_type = #tpu.core_type<tc>, window_params = [{transform_indices = @transform_0, window_bounds = array<i64: 16, 128>}, {pipeline_mode = #tpu.pipeline_mode<synchronous>, transform_indices = @transform_1, window_bounds = array<i64: 1, 128>}, {pipeline_mode = #tpu.pipeline_mode<synchronous>, transform_indices = @transform_2, window_bounds = array<i64: 1, 128>}, {transform_indices = @transform_3, window_bounds = array<i64: 16, 128>}]} {
    %c0 = arith.constant 0 : index
    %c0_0 = arith.constant 0 : index
    %0 = vector.load %arg1[%c0, %c0_0] : memref<16x128xbf16, #tpu.memory_space<vmem>>, vector<16x128xbf16>
    %1 = arith.extf %0 : vector<16x128xbf16> to vector<16x128xf32>
    %c0_1 = arith.constant 0 : index
    %c0_2 = arith.constant 0 : index
    %2 = vector.load %arg2[%c0_1, %c0_2] : memref<1x128xf32, #tpu.memory_space<vmem>>, vector<1x128xf32>
    %3 = vector.broadcast %2 : vector<1x128xf32> to vector<16x128xf32>
    %4 = arith.mulf %1, %3 : vector<16x128xf32>
    %c0_3 = arith.constant 0 : index
    %c0_4 = arith.constant 0 : index
    %5 = vector.load %arg3[%c0_3, %c0_4] : memref<1x128xf32, #tpu.memory_space<vmem>>, vector<1x128xf32>
    %6 = vector.broadcast %5 : vector<1x128xf32> to vector<16x128xf32>
    %7 = arith.addf %4, %6 : vector<16x128xf32>
    %cst = arith.constant 0.000000e+00 : f32
    %8 = vector.broadcast %cst : f32 to vector<16x128xf32>
    %9 = arith.maximumf %7, %8 : vector<16x128xf32>
    %cst_5 = arith.constant 0.000000e+00 : f32
    %10 = vector.broadcast %cst_5 : f32 to vector<16x128xf32>
    %11 = arith.minimumf %7, %10 : vector<16x128xf32>
    %cst_6 = arith.constant 2.000000e-01 : f32
    %12 = vector.broadcast %cst_6 : f32 to vector<16x128xf32>
    %13 = arith.mulf %12, %11 : vector<16x128xf32>
    %14 = arith.addf %9, %13 : vector<16x128xf32>
    %15 = arith.truncf %14 : vector<16x128xf32> to vector<16x128xbf16>
    %c0_7 = arith.constant 0 : index
    %c0_8 = arith.constant 0 : index
    %16 = vector.load %arg4[%c0_7, %c0_8] : memref<16x128xbf16, #tpu.memory_space<vmem>>, vector<16x128xbf16>
    tpu.vector_store %arg4[%c0_7, %c0_8], %15 {strides = array<i32>} : memref<16x128xbf16, #tpu.memory_space<vmem>>, vector<16x128xbf16>,
    return
  }
  func.func @transform_0(%arg0: i32) -> (i32, i32) {
    %c0_i32 = arith.constant 0 : i32
    %c0_i32_0 = arith.constant 0 : i32
    return %arg0, %c0_i32 : i32, i32
  }
  func.func @transform_1(%arg0: i32) -> (i32, i32) {
    %c0_i32 = arith.constant 0 : i32
    %c0_i32_0 = arith.constant 0 : i32
    %c0_i32_1 = arith.constant 0 : i32
    return %c0_i32, %c0_i32_0 : i32, i32
  }
  func.func @transform_2(%arg0: i32) -> (i32, i32) {
    %c0_i32 = arith.constant 0 : i32
    %c0_i32_0 = arith.constant 0 : i32
    %c0_i32_1 = arith.constant 0 : i32
    return %c0_i32, %c0_i32_0 : i32, i32
  }
  func.func @transform_3(%arg0: i32) -> (i32, i32) {
    %c0_i32 = arith.constant 0 : i32
    %c0_i32_0 = arith.constant 0 : i32
    return %arg0, %c0_i32 : i32, i32
  }
}

module attributes {stable_mosaic.version = 11 : i64} {
  func.func @_conv_bn_stats_kernel(%arg0: i32, %arg1: i32, %arg2: memref<16x128xbf16, #tpu.memory_space<vmem>>, %arg3: memref<128x128xbf16, #tpu.memory_space<vmem>>, %arg4: memref<16x128xbf16, #tpu.memory_space<vmem>>, %arg5: memref<8x128xf32, #tpu.memory_space<vmem>>, %arg6: memref<8x128xf32, #tpu.memory_space<vmem>>, %arg7: memref<16x128xf32, #tpu.memory_space<vmem>>) attributes {dimension_semantics = [#tpu.dimension_semantics<parallel>, #tpu.dimension_semantics<arbitrary>], iteration_bounds = array<i64: 2, 1>, scalar_prefetch = 0 : i64, scratch_operands = 1 : i64, tpu.core_type = #tpu.core_type<tc>, window_params = [{transform_indices = @transform_0, window_bounds = array<i64: 16, 128>}, {transform_indices = @transform_1, window_bounds = array<i64: 128, 128>}, {transform_indices = @transform_2, window_bounds = array<i64: 16, 128>}, {transform_indices = @transform_3, window_bounds = array<i64: 8, 128>}, {transform_indices = @transform_4, window_bounds = array<i64: 8, 128>}]} {
    %c0_i32 = arith.constant 0 : i32
    %0 = arith.cmpi eq, %arg1, %c0_i32 : i32
    %1 = arith.extui %0 : i1 to i32
    %c0_i32_0 = arith.constant 0 : i32
    %2 = arith.cmpi ne, %1, %c0_i32_0 : i32
    scf.if %2 {
      %cst_10 = arith.constant 0.000000e+00 : f32
      %12 = vector.broadcast %cst_10 : f32 to vector<16x128xf32>
      %c0_11 = arith.constant 0 : index
      %c0_12 = arith.constant 0 : index
      %13 = vector.load %arg7[%c0_11, %c0_12] : memref<16x128xf32, #tpu.memory_space<vmem>>, vector<16x128xf32>
      tpu.vector_store %arg7[%c0_11, %c0_12], %12 {strides = array<i32>} : memref<16x128xf32, #tpu.memory_space<vmem>>, vector<16x128xf32>,
    } else {
    }
    %c0 = arith.constant 0 : index
    %c0_1 = arith.constant 0 : index
    %3 = vector.load %arg7[%c0, %c0_1] : memref<16x128xf32, #tpu.memory_space<vmem>>, vector<16x128xf32>
    %c0_2 = arith.constant 0 : index
    %c0_3 = arith.constant 0 : index
    %4 = vector.load %arg2[%c0_2, %c0_3] : memref<16x128xbf16, #tpu.memory_space<vmem>>, vector<16x128xbf16>
    %c0_4 = arith.constant 0 : index
    %c0_5 = arith.constant 0 : index
    %5 = vector.load %arg3[%c0_4, %c0_5] : memref<128x128xbf16, #tpu.memory_space<vmem>>, vector<128x128xbf16>
    %cst = arith.constant dense<0.000000e+00> : vector<16x128xf32>
    %6 = tpu.matmul %4, %5, %cst {dimension_numbers = #tpu.dot_dimension_numbers<[1], [0], [0], [1], [0, 0, 1, 1], [], []>} : vector<16x128xbf16>, vector<128x128xbf16>, vector<16x128xf32> -> vector<16x128xf32>
    %7 = arith.addf %3, %6 : vector<16x128xf32>
    %c0_6 = arith.constant 0 : index
    %c0_7 = arith.constant 0 : index
    %8 = vector.load %arg7[%c0_6, %c0_7] : memref<16x128xf32, #tpu.memory_space<vmem>>, vector<16x128xf32>
    tpu.vector_store %arg7[%c0_6, %c0_7], %7 {strides = array<i32>} : memref<16x128xf32, #tpu.memory_space<vmem>>, vector<16x128xf32>,
    %c0_i32_8 = arith.constant 0 : i32
    %9 = arith.cmpi eq, %arg1, %c0_i32_8 : i32
    %10 = arith.extui %9 : i1 to i32
    %c0_i32_9 = arith.constant 0 : i32
    %11 = arith.cmpi ne, %10, %c0_i32_9 : i32
    scf.if %11 {
      %c0_10 = arith.constant 0 : index
      %c0_11 = arith.constant 0 : index
      %12 = vector.load %arg7[%c0_10, %c0_11] : memref<16x128xf32, #tpu.memory_space<vmem>>, vector<16x128xf32>
      %13 = arith.truncf %12 : vector<16x128xf32> to vector<16x128xbf16>
      %c0_12 = arith.constant 0 : index
      %c0_13 = arith.constant 0 : index
      %14 = vector.load %arg4[%c0_12, %c0_13] : memref<16x128xbf16, #tpu.memory_space<vmem>>, vector<16x128xbf16>
      tpu.vector_store %arg4[%c0_12, %c0_13], %13 {strides = array<i32>} : memref<16x128xbf16, #tpu.memory_space<vmem>>, vector<16x128xbf16>,
      %cst_14 = arith.constant dense<0.000000e+00> : vector<128xf32>
      %15 = vector.multi_reduction <add>, %12, %cst_14 [0] : vector<16x128xf32> to vector<128xf32>
      %16 = vector.shape_cast %15 : vector<128xf32> to vector<1x128xf32>
      %17 = vector.shape_cast %16 : vector<1x128xf32> to vector<1x128xf32>
      %18 = vector.broadcast %17 : vector<1x128xf32> to vector<8x128xf32>
      %c0_15 = arith.constant 0 : index
      %c0_16 = arith.constant 0 : index
      %19 = vector.load %arg5[%c0_15, %c0_16] : memref<8x128xf32, #tpu.memory_space<vmem>>, vector<8x128xf32>
      tpu.vector_store %arg5[%c0_15, %c0_16], %18 {strides = array<i32>} : memref<8x128xf32, #tpu.memory_space<vmem>>, vector<8x128xf32>,
      %20 = arith.mulf %12, %12 : vector<16x128xf32>
      %cst_17 = arith.constant dense<0.000000e+00> : vector<128xf32>
      %21 = vector.multi_reduction <add>, %20, %cst_17 [0] : vector<16x128xf32> to vector<128xf32>
      %22 = vector.shape_cast %21 : vector<128xf32> to vector<1x128xf32>
      %23 = vector.shape_cast %22 : vector<1x128xf32> to vector<1x128xf32>
      %24 = vector.broadcast %23 : vector<1x128xf32> to vector<8x128xf32>
      %c0_18 = arith.constant 0 : index
      %c0_19 = arith.constant 0 : index
      %25 = vector.load %arg6[%c0_18, %c0_19] : memref<8x128xf32, #tpu.memory_space<vmem>>, vector<8x128xf32>
      tpu.vector_store %arg6[%c0_18, %c0_19], %24 {strides = array<i32>} : memref<8x128xf32, #tpu.memory_space<vmem>>, vector<8x128xf32>,
    } else {
    }
    return
  }
  func.func @transform_0(%arg0: i32, %arg1: i32) -> (i32, i32) {
    %c0_i32 = arith.constant 0 : i32
    return %arg0, %arg1 : i32, i32
  }
  func.func @transform_1(%arg0: i32, %arg1: i32) -> (i32, i32) {
    %c0_i32 = arith.constant 0 : i32
    %c0_i32_0 = arith.constant 0 : i32
    return %arg1, %c0_i32 : i32, i32
  }
  func.func @transform_2(%arg0: i32, %arg1: i32) -> (i32, i32) {
    %c0_i32 = arith.constant 0 : i32
    %c0_i32_0 = arith.constant 0 : i32
    return %arg0, %c0_i32 : i32, i32
  }
  func.func @transform_3(%arg0: i32, %arg1: i32) -> (i32, i32) {
    %c0_i32 = arith.constant 0 : i32
    %c0_i32_0 = arith.constant 0 : i32
    return %arg0, %c0_i32 : i32, i32
  }
  func.func @transform_4(%arg0: i32, %arg1: i32) -> (i32, i32) {
    %c0_i32 = arith.constant 0 : i32
    %c0_i32_0 = arith.constant 0 : i32
    return %arg0, %c0_i32 : i32, i32
  }
}

module attributes {stable_mosaic.version = 11 : i64} {
  func.func @_conv_bn_stats_kernel(%arg0: i32, %arg1: i32, %arg2: memref<16x256xbf16, #tpu.memory_space<vmem>>, %arg3: memref<256x128xbf16, #tpu.memory_space<vmem>>, %arg4: memref<16x128xbf16, #tpu.memory_space<vmem>>, %arg5: memref<8x128xf32, #tpu.memory_space<vmem>>, %arg6: memref<8x128xf32, #tpu.memory_space<vmem>>, %arg7: memref<16x128xf32, #tpu.memory_space<vmem>>) attributes {dimension_semantics = [#tpu.dimension_semantics<parallel>, #tpu.dimension_semantics<arbitrary>], iteration_bounds = array<i64: 1, 1>, scalar_prefetch = 0 : i64, scratch_operands = 1 : i64, tpu.core_type = #tpu.core_type<tc>, window_params = [{transform_indices = @transform_0, window_bounds = array<i64: 16, 256>}, {transform_indices = @transform_1, window_bounds = array<i64: 256, 128>}, {transform_indices = @transform_2, window_bounds = array<i64: 16, 128>}, {transform_indices = @transform_3, window_bounds = array<i64: 8, 128>}, {transform_indices = @transform_4, window_bounds = array<i64: 8, 128>}]} {
    %c0_i32 = arith.constant 0 : i32
    %0 = arith.cmpi eq, %arg1, %c0_i32 : i32
    %1 = arith.extui %0 : i1 to i32
    %c0_i32_0 = arith.constant 0 : i32
    %2 = arith.cmpi ne, %1, %c0_i32_0 : i32
    scf.if %2 {
      %cst_10 = arith.constant 0.000000e+00 : f32
      %12 = vector.broadcast %cst_10 : f32 to vector<16x128xf32>
      %c0_11 = arith.constant 0 : index
      %c0_12 = arith.constant 0 : index
      %13 = vector.load %arg7[%c0_11, %c0_12] : memref<16x128xf32, #tpu.memory_space<vmem>>, vector<16x128xf32>
      tpu.vector_store %arg7[%c0_11, %c0_12], %12 {strides = array<i32>} : memref<16x128xf32, #tpu.memory_space<vmem>>, vector<16x128xf32>,
    } else {
    }
    %c0 = arith.constant 0 : index
    %c0_1 = arith.constant 0 : index
    %3 = vector.load %arg7[%c0, %c0_1] : memref<16x128xf32, #tpu.memory_space<vmem>>, vector<16x128xf32>
    %c0_2 = arith.constant 0 : index
    %c0_3 = arith.constant 0 : index
    %4 = vector.load %arg2[%c0_2, %c0_3] : memref<16x256xbf16, #tpu.memory_space<vmem>>, vector<16x256xbf16>
    %c0_4 = arith.constant 0 : index
    %c0_5 = arith.constant 0 : index
    %5 = vector.load %arg3[%c0_4, %c0_5] : memref<256x128xbf16, #tpu.memory_space<vmem>>, vector<256x128xbf16>
    %cst = arith.constant dense<0.000000e+00> : vector<16x128xf32>
    %6 = tpu.matmul %4, %5, %cst {dimension_numbers = #tpu.dot_dimension_numbers<[1], [0], [0], [1], [0, 0, 1, 1], [], []>} : vector<16x256xbf16>, vector<256x128xbf16>, vector<16x128xf32> -> vector<16x128xf32>
    %7 = arith.addf %3, %6 : vector<16x128xf32>
    %c0_6 = arith.constant 0 : index
    %c0_7 = arith.constant 0 : index
    %8 = vector.load %arg7[%c0_6, %c0_7] : memref<16x128xf32, #tpu.memory_space<vmem>>, vector<16x128xf32>
    tpu.vector_store %arg7[%c0_6, %c0_7], %7 {strides = array<i32>} : memref<16x128xf32, #tpu.memory_space<vmem>>, vector<16x128xf32>,
    %c0_i32_8 = arith.constant 0 : i32
    %9 = arith.cmpi eq, %arg1, %c0_i32_8 : i32
    %10 = arith.extui %9 : i1 to i32
    %c0_i32_9 = arith.constant 0 : i32
    %11 = arith.cmpi ne, %10, %c0_i32_9 : i32
    scf.if %11 {
      %c0_10 = arith.constant 0 : index
      %c0_11 = arith.constant 0 : index
      %12 = vector.load %arg7[%c0_10, %c0_11] : memref<16x128xf32, #tpu.memory_space<vmem>>, vector<16x128xf32>
      %13 = arith.truncf %12 : vector<16x128xf32> to vector<16x128xbf16>
      %c0_12 = arith.constant 0 : index
      %c0_13 = arith.constant 0 : index
      %14 = vector.load %arg4[%c0_12, %c0_13] : memref<16x128xbf16, #tpu.memory_space<vmem>>, vector<16x128xbf16>
      tpu.vector_store %arg4[%c0_12, %c0_13], %13 {strides = array<i32>} : memref<16x128xbf16, #tpu.memory_space<vmem>>, vector<16x128xbf16>,
      %cst_14 = arith.constant dense<0.000000e+00> : vector<128xf32>
      %15 = vector.multi_reduction <add>, %12, %cst_14 [0] : vector<16x128xf32> to vector<128xf32>
      %16 = vector.shape_cast %15 : vector<128xf32> to vector<1x128xf32>
      %17 = vector.shape_cast %16 : vector<1x128xf32> to vector<1x128xf32>
      %18 = vector.broadcast %17 : vector<1x128xf32> to vector<8x128xf32>
      %c0_15 = arith.constant 0 : index
      %c0_16 = arith.constant 0 : index
      %19 = vector.load %arg5[%c0_15, %c0_16] : memref<8x128xf32, #tpu.memory_space<vmem>>, vector<8x128xf32>
      tpu.vector_store %arg5[%c0_15, %c0_16], %18 {strides = array<i32>} : memref<8x128xf32, #tpu.memory_space<vmem>>, vector<8x128xf32>,
      %20 = arith.mulf %12, %12 : vector<16x128xf32>
      %cst_17 = arith.constant dense<0.000000e+00> : vector<128xf32>
      %21 = vector.multi_reduction <add>, %20, %cst_17 [0] : vector<16x128xf32> to vector<128xf32>
      %22 = vector.shape_cast %21 : vector<128xf32> to vector<1x128xf32>
      %23 = vector.shape_cast %22 : vector<1x128xf32> to vector<1x128xf32>
      %24 = vector.broadcast %23 : vector<1x128xf32> to vector<8x128xf32>
      %c0_18 = arith.constant 0 : index
      %c0_19 = arith.constant 0 : index
      %25 = vector.load %arg6[%c0_18, %c0_19] : memref<8x128xf32, #tpu.memory_space<vmem>>, vector<8x128xf32>
      tpu.vector_store %arg6[%c0_18, %c0_19], %24 {strides = array<i32>} : memref<8x128xf32, #tpu.memory_space<vmem>>, vector<8x128xf32>,
    } else {
    }
    return
  }
  func.func @transform_0(%arg0: i32, %arg1: i32) -> (i32, i32) {
    %c0_i32 = arith.constant 0 : i32
    return %arg0, %arg1 : i32, i32
  }
  func.func @transform_1(%arg0: i32, %arg1: i32) -> (i32, i32) {
    %c0_i32 = arith.constant 0 : i32
    %c0_i32_0 = arith.constant 0 : i32
    return %arg1, %c0_i32 : i32, i32
  }
  func.func @transform_2(%arg0: i32, %arg1: i32) -> (i32, i32) {
    %c0_i32 = arith.constant 0 : i32
    %c0_i32_0 = arith.constant 0 : i32
    return %arg0, %c0_i32 : i32, i32
  }
  func.func @transform_3(%arg0: i32, %arg1: i32) -> (i32, i32) {
    %c0_i32 = arith.constant 0 : i32
    %c0_i32_0 = arith.constant 0 : i32
    return %arg0, %c0_i32 : i32, i32
  }
  func.func @transform_4(%arg0: i32, %arg1: i32) -> (i32, i32) {
    %c0_i32 = arith.constant 0 : i32
    %c0_i32_0 = arith.constant 0 : i32
    return %arg0, %c0_i32 : i32, i32
  }
}

module attributes {stable_mosaic.version = 11 : i64} {
  func.func @_affine_lrelu_kernel(%arg0: i32, %arg1: memref<16x128xbf16, #tpu.memory_space<vmem>>, %arg2: memref<1x128xf32, #tpu.memory_space<vmem>>, %arg3: memref<1x128xf32, #tpu.memory_space<vmem>>, %arg4: memref<16x128xbf16, #tpu.memory_space<vmem>>) attributes {dimension_semantics = [#tpu.dimension_semantics<parallel>], iteration_bounds = array<i64: 1>, scalar_prefetch = 0 : i64, scratch_operands = 0 : i64, tpu.core_type = #tpu.core_type<tc>, window_params = [{transform_indices = @transform_0, window_bounds = array<i64: 16, 128>}, {pipeline_mode = #tpu.pipeline_mode<synchronous>, transform_indices = @transform_1, window_bounds = array<i64: 1, 128>}, {pipeline_mode = #tpu.pipeline_mode<synchronous>, transform_indices = @transform_2, window_bounds = array<i64: 1, 128>}, {transform_indices = @transform_3, window_bounds = array<i64: 16, 128>}]} {
    %c0 = arith.constant 0 : index
    %c0_0 = arith.constant 0 : index
    %0 = vector.load %arg1[%c0, %c0_0] : memref<16x128xbf16, #tpu.memory_space<vmem>>, vector<16x128xbf16>
    %1 = arith.extf %0 : vector<16x128xbf16> to vector<16x128xf32>
    %c0_1 = arith.constant 0 : index
    %c0_2 = arith.constant 0 : index
    %2 = vector.load %arg2[%c0_1, %c0_2] : memref<1x128xf32, #tpu.memory_space<vmem>>, vector<1x128xf32>
    %3 = vector.broadcast %2 : vector<1x128xf32> to vector<16x128xf32>
    %4 = arith.mulf %1, %3 : vector<16x128xf32>
    %c0_3 = arith.constant 0 : index
    %c0_4 = arith.constant 0 : index
    %5 = vector.load %arg3[%c0_3, %c0_4] : memref<1x128xf32, #tpu.memory_space<vmem>>, vector<1x128xf32>
    %6 = vector.broadcast %5 : vector<1x128xf32> to vector<16x128xf32>
    %7 = arith.addf %4, %6 : vector<16x128xf32>
    %cst = arith.constant 0.000000e+00 : f32
    %8 = vector.broadcast %cst : f32 to vector<16x128xf32>
    %9 = arith.maximumf %7, %8 : vector<16x128xf32>
    %cst_5 = arith.constant 0.000000e+00 : f32
    %10 = vector.broadcast %cst_5 : f32 to vector<16x128xf32>
    %11 = arith.minimumf %7, %10 : vector<16x128xf32>
    %cst_6 = arith.constant 2.000000e-01 : f32
    %12 = vector.broadcast %cst_6 : f32 to vector<16x128xf32>
    %13 = arith.mulf %12, %11 : vector<16x128xf32>
    %14 = arith.addf %9, %13 : vector<16x128xf32>
    %15 = arith.truncf %14 : vector<16x128xf32> to vector<16x128xbf16>
    %c0_7 = arith.constant 0 : index
    %c0_8 = arith.constant 0 : index
    %16 = vector.load %arg4[%c0_7, %c0_8] : memref<16x128xbf16, #tpu.memory_space<vmem>>, vector<16x128xbf16>
    tpu.vector_store %arg4[%c0_7, %c0_8], %15 {strides = array<i32>} : memref<16x128xbf16, #tpu.memory_space<vmem>>, vector<16x128xbf16>,
    return
  }
  func.func @transform_0(%arg0: i32) -> (i32, i32) {
    %c0_i32 = arith.constant 0 : i32
    %c0_i32_0 = arith.constant 0 : i32
    return %arg0, %c0_i32 : i32, i32
  }
  func.func @transform_1(%arg0: i32) -> (i32, i32) {
    %c0_i32 = arith.constant 0 : i32
    %c0_i32_0 = arith.constant 0 : i32
    %c0_i32_1 = arith.constant 0 : i32
    return %c0_i32, %c0_i32_0 : i32, i32
  }
  func.func @transform_2(%arg0: i32) -> (i32, i32) {
    %c0_i32 = arith.constant 0 : i32
    %c0_i32_0 = arith.constant 0 : i32
    %c0_i32_1 = arith.constant 0 : i32
    return %c0_i32, %c0_i32_0 : i32, i32
  }
  func.func @transform_3(%arg0: i32) -> (i32, i32) {
    %c0_i32 = arith.constant 0 : i32
    %c0_i32_0 = arith.constant 0 : i32
    return %arg0, %c0_i32 : i32, i32
  }
}

module attributes {stable_mosaic.version = 11 : i64} {
  func.func @_head_kernel(%arg0: memref<2x64xbf16, #tpu.memory_space<vmem>>, %arg1: memref<64x128xbf16, #tpu.memory_space<vmem>>, %arg2: memref<2x128xf32, #tpu.memory_space<vmem>>) attributes {dimension_semantics = [], scalar_prefetch = 0 : i64, scratch_operands = 0 : i64, tpu.core_type = #tpu.core_type<tc>} {
    %c0 = arith.constant 0 : index
    %c0_0 = arith.constant 0 : index
    %0 = vector.load %arg0[%c0, %c0_0] : memref<2x64xbf16, #tpu.memory_space<vmem>>, vector<2x64xbf16>
    %c0_1 = arith.constant 0 : index
    %c0_2 = arith.constant 0 : index
    %1 = vector.load %arg1[%c0_1, %c0_2] : memref<64x128xbf16, #tpu.memory_space<vmem>>, vector<64x128xbf16>
    %cst = arith.constant dense<0.000000e+00> : vector<2x128xf32>
    %2 = tpu.matmul %0, %1, %cst {dimension_numbers = #tpu.dot_dimension_numbers<[1], [0], [0], [1], [0, 0, 1, 1], [], []>} : vector<2x64xbf16>, vector<64x128xbf16>, vector<2x128xf32> -> vector<2x128xf32>
    %3 = arith.negf %2 : vector<2x128xf32>
    %4 = math.exp %3 : vector<2x128xf32>
    %cst_3 = arith.constant 1.000000e+00 : f32
    %5 = vector.broadcast %cst_3 : f32 to vector<2x128xf32>
    %6 = arith.addf %5, %4 : vector<2x128xf32>
    %7 = arith.divf %5, %6 : vector<2x128xf32>
    %c0_4 = arith.constant 0 : index
    %c0_5 = arith.constant 0 : index
    %8 = vector.load %arg2[%c0_4, %c0_5] : memref<2x128xf32, #tpu.memory_space<vmem>>, vector<2x128xf32>
    tpu.vector_store %arg2[%c0_4, %c0_5], %7 {strides = array<i32>} : memref<2x128xf32, #tpu.memory_space<vmem>>, vector<2x128xf32>,
    return
  }
}

module attributes {stable_mosaic.version = 11 : i64} {
  func.func @_conv_bn_stats_kernel(%arg0: i32, %arg1: i32, %arg2: memref<16x512xbf16, #tpu.memory_space<vmem>>, %arg3: memref<512x128xbf16, #tpu.memory_space<vmem>>, %arg4: memref<16x128xbf16, #tpu.memory_space<vmem>>, %arg5: memref<8x128xf32, #tpu.memory_space<vmem>>, %arg6: memref<8x128xf32, #tpu.memory_space<vmem>>, %arg7: memref<16x128xf32, #tpu.memory_space<vmem>>) attributes {dimension_semantics = [#tpu.dimension_semantics<parallel>, #tpu.dimension_semantics<arbitrary>], iteration_bounds = array<i64: 1, 1>, scalar_prefetch = 0 : i64, scratch_operands = 1 : i64, tpu.core_type = #tpu.core_type<tc>, window_params = [{transform_indices = @transform_0, window_bounds = array<i64: 16, 512>}, {transform_indices = @transform_1, window_bounds = array<i64: 512, 128>}, {transform_indices = @transform_2, window_bounds = array<i64: 16, 128>}, {transform_indices = @transform_3, window_bounds = array<i64: 8, 128>}, {transform_indices = @transform_4, window_bounds = array<i64: 8, 128>}]} {
    %c0_i32 = arith.constant 0 : i32
    %0 = arith.cmpi eq, %arg1, %c0_i32 : i32
    %1 = arith.extui %0 : i1 to i32
    %c0_i32_0 = arith.constant 0 : i32
    %2 = arith.cmpi ne, %1, %c0_i32_0 : i32
    scf.if %2 {
      %cst_10 = arith.constant 0.000000e+00 : f32
      %12 = vector.broadcast %cst_10 : f32 to vector<16x128xf32>
      %c0_11 = arith.constant 0 : index
      %c0_12 = arith.constant 0 : index
      %13 = vector.load %arg7[%c0_11, %c0_12] : memref<16x128xf32, #tpu.memory_space<vmem>>, vector<16x128xf32>
      tpu.vector_store %arg7[%c0_11, %c0_12], %12 {strides = array<i32>} : memref<16x128xf32, #tpu.memory_space<vmem>>, vector<16x128xf32>,
    } else {
    }
    %c0 = arith.constant 0 : index
    %c0_1 = arith.constant 0 : index
    %3 = vector.load %arg7[%c0, %c0_1] : memref<16x128xf32, #tpu.memory_space<vmem>>, vector<16x128xf32>
    %c0_2 = arith.constant 0 : index
    %c0_3 = arith.constant 0 : index
    %4 = vector.load %arg2[%c0_2, %c0_3] : memref<16x512xbf16, #tpu.memory_space<vmem>>, vector<16x512xbf16>
    %c0_4 = arith.constant 0 : index
    %c0_5 = arith.constant 0 : index
    %5 = vector.load %arg3[%c0_4, %c0_5] : memref<512x128xbf16, #tpu.memory_space<vmem>>, vector<512x128xbf16>
    %cst = arith.constant dense<0.000000e+00> : vector<16x128xf32>
    %6 = tpu.matmul %4, %5, %cst {dimension_numbers = #tpu.dot_dimension_numbers<[1], [0], [0], [1], [0, 0, 1, 1], [], []>} : vector<16x512xbf16>, vector<512x128xbf16>, vector<16x128xf32> -> vector<16x128xf32>
    %7 = arith.addf %3, %6 : vector<16x128xf32>
    %c0_6 = arith.constant 0 : index
    %c0_7 = arith.constant 0 : index
    %8 = vector.load %arg7[%c0_6, %c0_7] : memref<16x128xf32, #tpu.memory_space<vmem>>, vector<16x128xf32>
    tpu.vector_store %arg7[%c0_6, %c0_7], %7 {strides = array<i32>} : memref<16x128xf32, #tpu.memory_space<vmem>>, vector<16x128xf32>,
    %c0_i32_8 = arith.constant 0 : i32
    %9 = arith.cmpi eq, %arg1, %c0_i32_8 : i32
    %10 = arith.extui %9 : i1 to i32
    %c0_i32_9 = arith.constant 0 : i32
    %11 = arith.cmpi ne, %10, %c0_i32_9 : i32
    scf.if %11 {
      %c0_10 = arith.constant 0 : index
      %c0_11 = arith.constant 0 : index
      %12 = vector.load %arg7[%c0_10, %c0_11] : memref<16x128xf32, #tpu.memory_space<vmem>>, vector<16x128xf32>
      %13 = arith.truncf %12 : vector<16x128xf32> to vector<16x128xbf16>
      %c0_12 = arith.constant 0 : index
      %c0_13 = arith.constant 0 : index
      %14 = vector.load %arg4[%c0_12, %c0_13] : memref<16x128xbf16, #tpu.memory_space<vmem>>, vector<16x128xbf16>
      tpu.vector_store %arg4[%c0_12, %c0_13], %13 {strides = array<i32>} : memref<16x128xbf16, #tpu.memory_space<vmem>>, vector<16x128xbf16>,
      %cst_14 = arith.constant dense<0.000000e+00> : vector<128xf32>
      %15 = vector.multi_reduction <add>, %12, %cst_14 [0] : vector<16x128xf32> to vector<128xf32>
      %16 = vector.shape_cast %15 : vector<128xf32> to vector<1x128xf32>
      %17 = vector.shape_cast %16 : vector<1x128xf32> to vector<1x128xf32>
      %18 = vector.broadcast %17 : vector<1x128xf32> to vector<8x128xf32>
      %c0_15 = arith.constant 0 : index
      %c0_16 = arith.constant 0 : index
      %19 = vector.load %arg5[%c0_15, %c0_16] : memref<8x128xf32, #tpu.memory_space<vmem>>, vector<8x128xf32>
      tpu.vector_store %arg5[%c0_15, %c0_16], %18 {strides = array<i32>} : memref<8x128xf32, #tpu.memory_space<vmem>>, vector<8x128xf32>,
      %20 = arith.mulf %12, %12 : vector<16x128xf32>
      %cst_17 = arith.constant dense<0.000000e+00> : vector<128xf32>
      %21 = vector.multi_reduction <add>, %20, %cst_17 [0] : vector<16x128xf32> to vector<128xf32>
      %22 = vector.shape_cast %21 : vector<128xf32> to vector<1x128xf32>
      %23 = vector.shape_cast %22 : vector<1x128xf32> to vector<1x128xf32>
      %24 = vector.broadcast %23 : vector<1x128xf32> to vector<8x128xf32>
      %c0_18 = arith.constant 0 : index
      %c0_19 = arith.constant 0 : index
      %25 = vector.load %arg6[%c0_18, %c0_19] : memref<8x128xf32, #tpu.memory_space<vmem>>, vector<8x128xf32>
      tpu.vector_store %arg6[%c0_18, %c0_19], %24 {strides = array<i32>} : memref<8x128xf32, #tpu.memory_space<vmem>>, vector<8x128xf32>,
    } else {
    }
    return
  }
  func.func @transform_0(%arg0: i32, %arg1: i32) -> (i32, i32) {
    %c0_i32 = arith.constant 0 : i32
    return %arg0, %arg1 : i32, i32
  }
  func.func @transform_1(%arg0: i32, %arg1: i32) -> (i32, i32) {
    %c0_i32 = arith.constant 0 : i32
    %c0_i32_0 = arith.constant 0 : i32
    return %arg1, %c0_i32 : i32, i32
  }
  func.func @transform_2(%arg0: i32, %arg1: i32) -> (i32, i32) {
    %c0_i32 = arith.constant 0 : i32
    %c0_i32_0 = arith.constant 0 : i32
    return %arg0, %c0_i32 : i32, i32
  }
  func.func @transform_3(%arg0: i32, %arg1: i32) -> (i32, i32) {
    %c0_i32 = arith.constant 0 : i32
    %c0_i32_0 = arith.constant 0 : i32
    return %arg0, %c0_i32 : i32, i32
  }
  func.func @transform_4(%arg0: i32, %arg1: i32) -> (i32, i32) {
    %c0_i32 = arith.constant 0 : i32
    %c0_i32_0 = arith.constant 0 : i32
    return %arg0, %c0_i32 : i32, i32
  }
}

</mosaic_0001>

<bundles_post_ra>
// kernel: discriminator_forward.10
= control target key start
LH: loop header
LB: loop body
LE: loop exit
PB: predicated region body
PF: predicated region fallthrough
CT: control target
= control target key end

     0   :  { %s332_s12 = smov 0   ;;  %s355_s0 = inlined_call_operand.vmem [shape: bf16[32,128], index: 0, kind: input, shape index: {}]   ;;  %s356_s1 = inlined_call_operand.vmem [shape: f32[1,128], index: 1, kind: input, shape index: {}]   ;;  %s357_s2 = inlined_call_operand.vmem [shape: f32[1,128], index: 2, kind: input, shape index: {}]   ;;  %s358_s3 = inlined_call_operand.vmem [shape: bf16[32,128], index: 3, kind: output, shape index: {}]  }
   0x1 LB: > { %s270_s13 = sadd.s32 4294967295, %s310_s12   ;;  %p274_p0 = scmp.ge.s32.totalorder %s310_s12, 1  ;;  %s310_s12 = sphi %s332_s12, %s13_s12  }
   0x2   : > { %p138_p1 = scmp.lt.s32.totalorder %s310_s12, 3 }
   0x4   : > { %p139_p2 = pnand %p274_p0, %p138_p1 }
   0x5   : > { %s275_s14 = sshll.u32 (!%p139_p2), %s270_s13, 1  ;;  %v279_v1 = vld [vmem:[%s356_s1] ss:$0 sm:$0xff] (!%p139_p2) }
   0x6   : > { %142 = sbr.rel (%p139_p2) target bundleno = 32 (0x20), region = 32  ;;  %p163_p3 = scmp.lt.s32.totalorder (!%p139_p2), %s275_s14, 3  ;;  %v280_v4 = vld [vmem:[%s357_s2] ss:$0 sm:$0xff] (!%p139_p2) }
   0xd   : > { %s360_s14 = smov (!%p163_p3, %s275_s14), 3 }
   0xe   : > { %s276_s15 = sshll.u32 %s360_s14, 2 }
   0xf   : > { %s166_s18 = scalar_lea.vmem %s355_s0, %s276_s15  ;;  %s172_s25 = scalar_lea.vmem %s358_s3, %s276_s15 }
  0x10   : > { %v288_v0 = vld [vmem:[%s166_s18] sm:$0xff]  }
  0x11   : > { %v289_v2 = vunpack.c.l.bf16 %v288_v0  ;;  %v290_v3 = vunpack.c.h.bf16 %v288_v0 }
  0x13   : > { %v185_v5 = vmul.f32 %v289_v2, %v279_v1  ;;  %v186_v6 = vmul.f32 %v290_v3, %v279_v1 }
  0x15   : > { %v194_v7 = vadd.f32 %v280_v4, %v185_v5  ;;  %v195_v8 = vadd.f32 %v280_v4, %v186_v6 }
  0x17   : > { %v196_v9 = vmax.f32 %v194_v7, 0.0  ;;  %v197_v10 = vmax.f32 %v195_v8, 0.0  ;;  %v198_v11 = vmin.f32 %v194_v7, 0.0  ;;  %v199_v12 = vmin.f32 %v195_v8, 0.0 }
  0x19   : > { %v200_v13 = vmul.f32 0.2, %v198_v11  ;;  %v201_v14 = vmul.f32 0.2, %v199_v12 }
  0x1b   : > { %v202_v15 = vadd.f32 %v200_v13, %v196_v9  ;;  %v203_v16 = vadd.f32 %v201_v14, %v197_v10 }
  0x1d   : > { %v294_v17 = vpack.c.bf16 %v203_v16, %v202_v15 }
  0x1f   : > { %295 = vst [vmem:[%s172_s25] sm:$0xff] %v294_v17  }
  0x20 PF: > { %s13_s12 = sadd.s32 1, %s310_s12  }
  0x21   : > { %p10_p4 = scmp.ge.s32.totalorder %s13_s12, 4  }
  0x23   :  { %12 = sbr.rel (!%p10_p4) target bundleno = 1 (0x1), region = 62 }

// kernel: discriminator_forward.8
= control target key start
LH: loop header
LB: loop body
LE: loop exit
PB: predicated region body
PF: predicated region fallthrough
CT: control target
= control target key end

     0   :  { %s684_s9 = smov 0   ;;  %s686_s10 = smov 0   ;;  %s733_s0 = inlined_call_operand.vmem [shape: bf16[128,48], index: 0, kind: input, shape index: {}]   ;;  %s734_s1 = inlined_call_operand.vmem [shape: bf16[48,128], index: 1, kind: input, shape index: {}]   ;;  %s735_s2 = inlined_call_operand.vmem [shape: bf16[128,128], index: 2, kind: output, shape index: {}]  }
   0x1   :  { %s688_s11 = smov 0  }
   0x2 LB: > { %s24_s12 = sadd.s32 1, %s663_s10  ;;  %p530_p0 = scmp.ge.s32.totalorder %s667_s11, 1  ;;  %s667_s11 = sphi %s688_s11, %s12_s11   ;;  %s663_s10 = sphi %s686_s10, %s737_s10   ;;  %s659_s9 = sphi %s684_s9, %s736_s9  }
   0x3   : > { %p26_p1 = scmp.ge.s32.totalorder %s24_s12, 2  ;;  %p141_p2 = scmp.lt.s32.totalorder %s667_s11, 3 }
   0x5   : > { %s739_s12 = smov (%p26_p1, %s24_s12), 0  ;;  %p142_p3 = pnand %p530_p0, %p141_p2 }
   0x6   : > { %v638_v0 = vld [vmem:[%s734_s1] sm:$0xff] (!%p142_p3)   ;;  %s531_s15 = sshll.u32 (!%p142_p3), %s659_s9, 3  ;;  %v639_v1 = vld [vmem:[%s734_s1 + $0x8] sm:$0xff] (!%p142_p3)   ;;  %v640_v2 = vld [vmem:[%s734_s1 + $0x10] sm:$0xff] (!%p142_p3)   ;;  %vm265_vm0 = vcmask (!%p142_p3), 392192  }
   0x7   : > { %145 = sbr.rel (%p142_p3) target bundleno = 245 (0xf5), region = 28  ;;  %p172_p4 = scmp.lt.s32.totalorder (!%p142_p3), %s531_s15, 15  ;;  %594 = vmatprep.subr.bf16.mxu0 (!%p142_p3), %v638_v0  ;;  %608 = vmatprep.subr.bf16.mxu1 (!%p142_p3), %v638_v0 }
   0x8   : > { %595 = vmatpush3.bf16.msra.mxu0 (!%p142_p3), %v638_v0  ;;  %611 = vmatpush3.bf16.msra.mxu1 (!%p142_p3), %v638_v0 }
   0x9   : > { %596 = vmatprep.subr.bf16.mxu0 (!%p142_p3), %v639_v1  ;;  %609 = vmatprep.subr.bf16.mxu1 (!%p142_p3), %v639_v1 }
   0xc   : > { %597 = vmatpush3.bf16.msra.mxu0 (!%p142_p3), %v639_v1  ;;  %612 = vmatpush3.bf16.msra.mxu1 (!%p142_p3), %v639_v1 }
   0xd   : > { %598 = vmatprep.subr.bf16.mxu0 (!%p142_p3), %v640_v2  ;;  %610 = vmatprep.subr.bf16.mxu1 (!%p142_p3), %v640_v2 }
   0xe   : > { %s741_s15 = smov (!%p172_p4, %s531_s15), 15 }
   0xf   : > { %s532_s20 = sshll.u32 %s741_s15, 2 }
  0x10   : > { %s178_s23 = scalar_lea.vmem %s733_s0, %s532_s20  ;;  %599 = vmatpush3.bf16.msra.mxu0 %v640_v2  ;;  %613 = vmatpush3.bf16.msra.mxu1 %v640_v2  ;;  %s190_s26 = scalar_lea.vmem %s735_s2, %s532_s20 }
  0x11   : > { %v641_v3 = vld [vmem:[%s178_s23] sm:$0xff]   ;;  %v642_v4 = vld [vmem:[%s178_s23 + $0x10] sm:$0xff]   ;;  %v643_v5 = vld [vmem:[%s178_s23 + $0x8] sm:$0xff]  }
  0x12   : > { %600 = vmatprep.mubr.msk.bf16.mxu0 %vm265_vm0, %v641_v3  ;;  %604 = vmatprep.mubr.msk.bf16.mxu1 %vm265_vm0, %v642_v4  ;;  %v644_v6 = vld [vmem:[%s178_s23 + $0x18] sm:$0xff]  }
  0x13   : > { %601 = vmatmul.mubr.msk.bf16.vlgmr.msra.gmra.mrb[0].mxu0 %vm265_vm0, %v643_v5  ;;  %605 = vmatmul.mubr.msk.bf16.vlgmr.msra.gmra.mrb[0].mxu1 %vm265_vm0, %v644_v6 }
  0xe6   : > { %v602_v7 = vpop.f32.mrb[0].mxu0  ;;  %v606_v8 = vpop.f32.mrb[0].mxu1 }
  0xe7   : > { %v380_v9 = vmin.f32 %v602_v7, 0.0  ;;  %v384_v10 = vmin.f32 %v606_v8, 0.0  ;;  %v312_v11 = vpop.f32.mrb[1].mxu0  ;;  %v328_v12 = vpop.f32.mrb[1].mxu1  ;;  %v372_v17 = vmax.f32 %v602_v7, 0.0  ;;  %v376_v20 = vmax.f32 %v606_v8, 0.0 }
  0xe8   : > { %v378_v13 = vmin.f32 %v312_v11, 0.0  ;;  %v382_v14 = vmin.f32 %v328_v12, 0.0  ;;  %v603_v15 = vpop.f32.mrb[2].mxu0  ;;  %v607_v16 = vpop.f32.mrb[2].mxu1  ;;  %v370_v28 = vmax.f32 %v312_v11, 0.0  ;;  %v374_v37 = vmax.f32 %v328_v12, 0.0 }
  0xe9   : > { %v388_v18 = vmul.f32 0.2, %v380_v9  ;;  %v381_v19 = vmin.f32 %v603_v15, 0.0  ;;  %v392_v21 = vmul.f32 0.2, %v384_v10  ;;  %v373_v22 = vmax.f32 %v603_v15, 0.0 }
  0xea   : > { %v385_v23 = vmin.f32 %v607_v16, 0.0  ;;  %v386_v24 = vmul.f32 0.2, %v378_v13  ;;  %v315_v26 = vpop.f32.mrb[3].mxu0  ;;  %v331_v27 = vpop.f32.mrb[3].mxu1  ;;  %v377_v30 = vmax.f32 %v607_v16, 0.0 }
  0xeb   : > { %v389_v25 = vmul.f32 0.2, %v381_v19  ;;  %v390_v29 = vmul.f32 0.2, %v382_v14  ;;  %v396_v32 = vadd.f32 %v388_v18, %v372_v17  ;;  %v379_v34 = vmin.f32 %v315_v26, 0.0 }
  0xec   : > { %v393_v31 = vmul.f32 0.2, %v385_v23  ;;  %v383_v35 = vmin.f32 %v331_v27, 0.0  ;;  %v400_v36 = vadd.f32 %v392_v21, %v376_v20  ;;  %v371_v39 = vmax.f32 %v315_v26, 0.0 }
  0xed   : > { %v397_v33 = vadd.f32 %v389_v25, %v373_v22  ;;  %v387_v41 = vmul.f32 0.2, %v379_v34  ;;  %v375_v42 = vmax.f32 %v331_v27, 0.0  ;;  %v394_v45 = vadd.f32 %v386_v24, %v370_v28 }
  0xee   : > { %v401_v38 = vadd.f32 %v393_v31, %v377_v30  ;;  %v391_v43 = vmul.f32 0.2, %v383_v35  ;;  %v398_v46 = vadd.f32 %v390_v29, %v374_v37 }
  0xef   : > { %v572_v40 = vpack.c.bf16 %v397_v33, %v396_v32  ;;  %v395_v47 = vadd.f32 %v387_v41, %v371_v39 }
  0xf0   : > { %v582_v44 = vpack.c.bf16 %v401_v38, %v400_v36  ;;  %v399_v48 = vadd.f32 %v391_v43, %v375_v42 }
  0xf1   : > { %584 = vst [vmem:[%s190_s26 + $0x8] sm:$0xff] %v572_v40   ;;  %v567_v49 = vpack.c.bf16 %v395_v47, %v394_v45 }
  0xf2   : > { %586 = vst [vmem:[%s190_s26 + $0x18] sm:$0xff] %v582_v44   ;;  %v577_v50 = vpack.c.bf16 %v399_v48, %v398_v46 }
  0xf3   : > { %568 = vst [vmem:[%s190_s26] sm:$0xff] %v567_v49  }
  0xf4   : > { %585 = vst [vmem:[%s190_s26 + $0x10] sm:$0xff] %v577_v50  }
  0xf5 PF: > { %s12_s11 = sadd.s32 1, %s667_s11   ;;  %s736_s9 = smov %s663_s10 }
  0xf6   : > { %p9_p5 = scmp.ge.s32.totalorder %s12_s11, 4   ;;  %s737_s10 = smov %s739_s12 }
  0xf8   :  { %11 = sbr.rel (!%p9_p5) target bundleno = 2 (0x2), region = 69 }

// kernel: discriminator_forward.9
= control target key start
LH: loop header
LB: loop body
LE: loop exit
PB: predicated region body
PF: predicated region fallthrough
CT: control target
= control target key end

     0   :  { %s718_s15 = smov 0   ;;  %s720_s16 = smov 0   ;;  %s786_s0 = inlined_call_operand.vmem [shape: bf16[32,128], index: 0, kind: input, shape index: {}]   ;;  %s787_s1 = inlined_call_operand.vmem [shape: bf16[128,128], index: 1, kind: input, shape index: {}]   ;;  %s788_s2 = inlined_call_operand.vmem [shape: bf16[32,128], index: 2, kind: output, shape index: {0}]   ;;  %s789_s3 = inlined_call_operand.vmem [shape: f32[16,128], index: 3, kind: output, shape index: {1}]   ;;  %s790_s4 = inlined_call_operand.vmem [shape: f32[16,128], index: 4, kind: output, shape index: {2}]  }
   0x1   :  { %s722_s17 = smov 0  }
   0x2 LB: > { %s27_s18 = sadd.s32 1, %s685_s16  ;;  %p576_p0 = scmp.ge.s32.totalorder %s689_s17, 1  ;;  %s689_s17 = sphi %s722_s17, %s15_s17   ;;  %s685_s16 = sphi %s720_s16, %s792_s16   ;;  %s681_s15 = sphi %s718_s15, %s791_s15  }
   0x3   : > { %p29_p1 = scmp.ge.s32.totalorder %s27_s18, 2  ;;  %p196_p2 = scmp.lt.s32.totalorder %s689_s17, 3 }
   0x5   : > { %s794_s18 = smov (%p29_p1, %s27_s18), 0  ;;  %p197_p3 = pnand %p576_p0, %p196_p2 }
   0x6   : > { %v658_v0 = vld [vmem:[%s787_s1] sm:$0xff] (!%p197_p3)   ;;  %v691_v1 = vmov (!%p197_p3), 0.0   ;;  %v659_v2 = vld [vmem:[%s787_s1 + $0x8] sm:$0xff] (!%p197_p3)   ;;  %vm692_vm0 = vmmov (!%p197_p3), 0   ;;  %s577_s23 = sshll.u32 (!%p197_p3), %s681_s15, 1  ;;  %v660_v3 = vld [vmem:[%s787_s1 + $0x10] sm:$0xff] (!%p197_p3)  }
   0x7   : > { %200 = sbr.rel (%p197_p3) target bundleno = 270 (0x10e), region = 28  ;;  %612 = vmatprep.subr.bf16.mxu0 (!%p197_p3), %v691_v1  ;;  %628 = vmatprep.mubr.msk.bf16.mxu0 (!%p197_p3), %vm692_vm0, %v691_v1  ;;  %p239_p4 = scmp.lt.s32.totalorder (!%p197_p3), %s577_s23, 3  ;;  %v661_v4 = vld [vmem:[%s787_s1 + $0x18] sm:$0xff] (!%p197_p3)   ;;  %v662_v5 = vld [vmem:[%s787_s1 + $0x20] sm:$0xff] (!%p197_p3)   ;;  %v663_v6 = vld [vmem:[%s787_s1 + $0x28] sm:$0xff] (!%p197_p3)  }
   0x8   : > { %613 = vmatpush3.bf16.msra.mxu0 (!%p197_p3), %v658_v0  ;;  %v664_v7 = vld [vmem:[%s787_s1 + $0x30] sm:$0xff] (!%p197_p3)   ;;  %v665_v8 = vld [vmem:[%s787_s1 + $0x38] sm:$0xff] (!%p197_p3)   ;;  %p259_p5 = scmp.lt.s32.totalorder (!%p197_p3), %s681_s15, 1 }
   0x9   : > { %614 = vmatprep.subr.bf16.mxu0 (!%p197_p3), %v691_v1 }
   0xc   : > { %615 = vmatpush3.bf16.msra.mxu0 (!%p197_p3), %v659_v2 }
   0xd   : > { %616 = vmatprep.subr.bf16.mxu0 (!%p197_p3), %v691_v1 }
   0xe   : > { %s796_s23 = smov (!%p239_p4, %s577_s23), 3  ;;  %s798_s15 = smov (!%p259_p5, %s681_s15), 1 }
   0xf   : > { %s578_s26 = sshll.u32 %s796_s23, 2  ;;  %s581_s21 = sshll.u32 %s798_s15, 3 }
  0x10   : > { %s245_s29 = scalar_lea.vmem %s786_s0, %s578_s26  ;;  %617 = vmatpush3.bf16.msra.mxu0 %v660_v3  ;;  %s257_s20 = scalar_lea.vmem %s788_s2, %s578_s26 }
  0x11   : > { %618 = vmatprep.subr.bf16.mxu0 %v691_v1  ;;  %v666_v9 = vld [vmem:[%s245_s29] sm:$0xff]   ;;  %s262_s24 = scalar_lea.vmem %s789_s3, %s581_s21  ;;  %s266_s27 = scalar_lea.vmem %s790_s4, %s581_s21 }
  0x14   : > { %619 = vmatpush3.bf16.msra.mxu0 %v661_v4 }
  0x15   : > { %620 = vmatprep.subr.bf16.mxu0 %v691_v1 }
  0x18   : > { %621 = vmatpush3.bf16.msra.mxu0 %v662_v5 }
  0x19   : > { %622 = vmatprep.subr.bf16.mxu0 %v691_v1 }
  0x1c   : > { %623 = vmatpush3.bf16.msra.mxu0 %v663_v6 }
  0x1d   : > { %624 = vmatprep.subr.bf16.mxu0 %v691_v1 }
  0x20   : > { %625 = vmatpush3.bf16.msra.mxu0 %v664_v7 }
  0x21   : > { %626 = vmatprep.subr.bf16.mxu0 %v691_v1 }
  0x24   : > { %627 = vmatpush3.bf16.msra.mxu0 %v665_v8 }
  0x27   : > { %629 = vmatmul.mubr.bf16.vlgmr.msra.gmra.mrb[0].mxu0 %v666_v9 }
  0xfa   : > { %v382_v10 = vpop.f32.mrb[0].mxu0 }
  0xfb   : > { %v630_v11 = vpop.f32.mrb[1].mxu0  ;;  %v416_v13 = vmul.f32 %v382_v10, %v382_v10 }
  0xfc   : > { %v385_v12 = vpop.f32.mrb[2].mxu0 }
  0xfd   : > { %v601_v14 = vpack.c.bf16 %v385_v12, %v382_v10  ;;  %v408_v15 = vadd.f32 %v385_v12, %v382_v10  ;;  %v417_v16 = vmul.f32 %v385_v12, %v385_v12  ;;  %v631_v17 = vpop.f32.mrb[3].mxu0 }
  0xff   : > { %602 = vst [vmem:[%s257_s20] sm:$0xff] %v601_v14   ;;  %v409_v18 = vrot.slane %v408_v15, 4  ;;  %v418_v19 = vadd.f32 %v417_v16, %v416_v13 }
 0x101   : > { %v410_v20 = vadd.f32 %v409_v18, %v408_v15  ;;  %v419_v21 = vrot.slane %v418_v19, 4 }
 0x103   : > { %v411_v22 = vrot.slane %v410_v20, 2  ;;  %v420_v23 = vadd.f32 %v419_v21, %v418_v19 }
 0x105   : > { %v412_v24 = vadd.f32 %v411_v22, %v410_v20  ;;  %v421_v25 = vrot.slane %v420_v23, 2 }
 0x107   : > { %v413_v26 = vrot.slane %v412_v24, 1  ;;  %v422_v27 = vadd.f32 %v421_v25, %v420_v23 }
 0x109   : > { %v414_v28 = vadd.f32 %v413_v26, %v412_v24  ;;  %v423_v29 = vrot.slane %v422_v27, 1 }
 0x10b   : > { %415 = vst [vmem:[%s262_s24] sm:$0xff] %v414_v28  ;;  %v424_v30 = vadd.f32 %v423_v29, %v422_v27 }
 0x10d   : > { %425 = vst [vmem:[%s266_s27] sm:$0xff] %v424_v30 }
 0x10e PF: > { %s15_s17 = sadd.s32 1, %s689_s17   ;;  %s791_s15 = smov %s685_s16 }
 0x10f   : > { %p12_p6 = scmp.ge.s32.totalorder %s15_s17, 4   ;;  %s792_s16 = smov %s794_s18 }
 0x111   :  { %14 = sbr.rel (!%p12_p6) target bundleno = 2 (0x2), region = 93 }

// kernel: discriminator_forward.12
= control target key start
LH: loop header
LB: loop body
LE: loop exit
PB: predicated region body
PF: predicated region fallthrough
CT: control target
= control target key end

     0   :  { %s105_s0 = inlined_call_operand.vmem [shape: bf16[16,128], index: 0, kind: input, shape index: {}]   ;;  %s106_s1 = inlined_call_operand.vmem [shape: f32[1,128], index: 1, kind: input, shape index: {}]   ;;  %s107_s2 = inlined_call_operand.vmem [shape: f32[1,128], index: 2, kind: input, shape index: {}]   ;;  %s108_s3 = inlined_call_operand.vmem [shape: bf16[16,128], index: 3, kind: output, shape index: {}]  }
   0x1   :  { %v65_v0 = vld [vmem:[%s105_s0] sm:$0xff]  }
   0x2   :  { %v58_v1 = vld [vmem:[%s106_s1] ss:$0 sm:$0xff]  ;;  %v66_v2 = vunpack.c.l.bf16 %v65_v0  ;;  %v67_v3 = vunpack.c.h.bf16 %v65_v0 }
   0x3   :  { %v59_v4 = vld [vmem:[%s107_s2] ss:$0 sm:$0xff] }
   0x4   :  { %v25_v5 = vmul.f32 %v66_v2, %v58_v1  ;;  %v26_v6 = vmul.f32 %v67_v3, %v58_v1 }
   0x6   :  { %v34_v7 = vadd.f32 %v59_v4, %v25_v5  ;;  %v35_v8 = vadd.f32 %v59_v4, %v26_v6 }
   0x8   :  { %v36_v9 = vmax.f32 %v34_v7, 0.0  ;;  %v37_v10 = vmax.f32 %v35_v8, 0.0  ;;  %v38_v11 = vmin.f32 %v34_v7, 0.0  ;;  %v39_v12 = vmin.f32 %v35_v8, 0.0 }
   0xa   :  { %v40_v13 = vmul.f32 0.2, %v38_v11  ;;  %v41_v14 = vmul.f32 0.2, %v39_v12 }
   0xc   :  { %v42_v15 = vadd.f32 %v40_v13, %v36_v9  ;;  %v43_v16 = vadd.f32 %v41_v14, %v37_v10 }
   0xe   :  { %v71_v17 = vpack.c.bf16 %v43_v16, %v42_v15 }
  0x10   :  { %72 = vst [vmem:[%s108_s3] sm:$0xff] %v71_v17  }

// kernel: discriminator_forward.11
= control target key start
LH: loop header
LB: loop body
LE: loop exit
PB: predicated region body
PF: predicated region fallthrough
CT: control target
= control target key end

     0   :  { %s409_s1 = inlined_call_operand.vmem [shape: bf16[256,128], index: 1, kind: input, shape index: {}]   ;;  %s410_s0 = inlined_call_operand.vmem [shape: bf16[16,256], index: 0, kind: input, shape index: {}]   ;;  %s411_s2 = inlined_call_operand.vmem [shape: bf16[16,128], index: 2, kind: output, shape index: {0}]   ;;  %s412_s3 = inlined_call_operand.vmem [shape: f32[8,128], index: 3, kind: output, shape index: {1}]   ;;  %s413_s4 = inlined_call_operand.vmem [shape: f32[8,128], index: 4, kind: output, shape index: {2}]  }
   0x1   :  { %v302_v0 = vld [vmem:[%s409_s1 + $0x40] sm:$0xff]   ;;  %v304_v2 = vld [vmem:[%s409_s1 + $0x48] sm:$0xff]   ;;  %v306_v4 = vld [vmem:[%s409_s1 + $0x50] sm:$0xff]  }
   0x2   :  { %v303_v1 = vld [vmem:[%s409_s1] sm:$0xff]   ;;  %280 = vmatprep.subr.bf16.mxu0 %v302_v0  ;;  %v305_v3 = vld [vmem:[%s409_s1 + $0x8] sm:$0xff]   ;;  %v307_v5 = vld [vmem:[%s409_s1 + $0x10] sm:$0xff]  }
   0x3   :  { %281 = vmatpush3.bf16.msra.mxu0 %v303_v1  ;;  %v308_v6 = vld [vmem:[%s409_s1 + $0x58] sm:$0xff]   ;;  %v310_v8 = vld [vmem:[%s409_s1 + $0x60] sm:$0xff]   ;;  %v312_v10 = vld [vmem:[%s409_s1 + $0x68] sm:$0xff]  }
   0x4   :  { %282 = vmatprep.subr.bf16.mxu0 %v304_v2  ;;  %v309_v7 = vld [vmem:[%s409_s1 + $0x18] sm:$0xff]   ;;  %v311_v9 = vld [vmem:[%s409_s1 + $0x20] sm:$0xff]   ;;  %v313_v12 = vld [vmem:[%s409_s1 + $0x28] sm:$0xff]  }
   0x5   :  { %v320_v11 = vld [vmem:[%s410_s0 + $0x4] ss:$8 sps:$4 sm:$0xff]   ;;  %v314_v13 = vld [vmem:[%s409_s1 + $0x70] sm:$0xff]   ;;  %v316_v15 = vld [vmem:[%s409_s1 + $0x78] sm:$0xff]  }
   0x6   :  { %195 = vmatprep.mubr.bf16.mxu0 %v320_v11  ;;  %v315_v14 = vld [vmem:[%s409_s1 + $0x30] sm:$0xff]   ;;  %v317_v16 = vld [vmem:[%s409_s1 + $0x38] sm:$0xff]   ;;  %v318_v17 = vld [vmem:[%s410_s0] ss:$8 sps:$4 sm:$0xff]  }
   0x7   :  { %283 = vmatpush3.bf16.msra.mxu0 %v305_v3 }
   0x8   :  { %284 = vmatprep.subr.bf16.mxu0 %v306_v4 }
   0xb   :  { %285 = vmatpush3.bf16.msra.mxu0 %v307_v5 }
   0xc   :  { %286 = vmatprep.subr.bf16.mxu0 %v308_v6 }
   0xf   :  { %287 = vmatpush3.bf16.msra.mxu0 %v309_v7 }
  0x10   :  { %288 = vmatprep.subr.bf16.mxu0 %v310_v8 }
  0x13   :  { %289 = vmatpush3.bf16.msra.mxu0 %v311_v9 }
  0x14   :  { %290 = vmatprep.subr.bf16.mxu0 %v312_v10 }
  0x17   :  { %291 = vmatpush3.bf16.msra.mxu0 %v313_v12 }
  0x18   :  { %292 = vmatprep.subr.bf16.mxu0 %v314_v13 }
  0x1b   :  { %293 = vmatpush3.bf16.msra.mxu0 %v315_v14 }
  0x1c   :  { %294 = vmatprep.subr.bf16.mxu0 %v316_v15 }
  0x1f   :  { %295 = vmatpush3.bf16.msra.mxu0 %v317_v16 }
  0x22   :  { %196 = vmatmul.mubr.bf16.vlgmr.msra.gmra.mrb[0].mxu0 %v318_v17 }
  0xf5   :  { %v296_v18 = vpop.f32.mrb[0].mxu0 }
  0xf6   :  { %v297_v19 = vpop.f32.mrb[1].mxu0 }
  0xf7   :  { %v298_v20 = vadd.f32 %v297_v19, %v296_v18  ;;  %v299_v21 = vpop.f32.mrb[2].mxu0 }
  0xf8   :  { %v300_v22 = vpop.f32.mrb[3].mxu0 }
  0xf9   :  { %v301_v23 = vadd.f32 %v300_v22, %v299_v21  ;;  %v231_v24 = vmul.f32 %v298_v20, %v298_v20 }
  0xfb   :  { %v278_v25 = vpack.c.bf16 %v301_v23, %v298_v20  ;;  %v223_v26 = vadd.f32 %v301_v23, %v298_v20  ;;  %v232_v27 = vmul.f32 %v301_v23, %v301_v23 }
  0xfd   :  { %279 = vst [vmem:[%s411_s2] sm:$0xff] %v278_v25   ;;  %v224_v28 = vrot.slane %v223_v26, 4  ;;  %v233_v29 = vadd.f32 %v232_v27, %v231_v24 }
  0xff   :  { %v225_v30 = vadd.f32 %v224_v28, %v223_v26  ;;  %v234_v31 = vrot.slane %v233_v29, 4 }
 0x101   :  { %v226_v32 = vrot.slane %v225_v30, 2  ;;  %v235_v33 = vadd.f32 %v234_v31, %v233_v29 }
 0x103   :  { %v227_v34 = vadd.f32 %v226_v32, %v225_v30  ;;  %v236_v35 = vrot.slane %v235_v33, 2 }
 0x105   :  { %v228_v36 = vrot.slane %v227_v34, 1  ;;  %v237_v37 = vadd.f32 %v236_v35, %v235_v33 }
 0x107   :  { %v229_v38 = vadd.f32 %v228_v36, %v227_v34  ;;  %v238_v39 = vrot.slane %v237_v37, 1 }
 0x109   :  { %230 = vst [vmem:[%s412_s3] sm:$0xff] %v229_v38  ;;  %v239_v40 = vadd.f32 %v238_v39, %v237_v37 }
 0x10b   :  { %240 = vst [vmem:[%s413_s4] sm:$0xff] %v239_v40 }

// kernel: discriminator_forward.15
= control target key start
LH: loop header
LB: loop body
LE: loop exit
PB: predicated region body
PF: predicated region fallthrough
CT: control target
= control target key end

     0   :  { %v133_v0 = vmov 0.0   ;;  %vm134_vm0 = vmmov 0   ;;  %vm45_vm1 = vcmask 523264   ;;  %s168_s1 = inlined_call_operand.vmem [shape: bf16[64,128], index: 1, kind: input, shape index: {}]   ;;  %s169_s0 = inlined_call_operand.vmem [shape: bf16[2,64], index: 0, kind: input, shape index: {}]   ;;  %s170_s2 = inlined_call_operand.vmem [shape: f32[2,128], index: 2, kind: output, shape index: {}]  }
   0x1   :  { %111 = vmatprep.subr.bf16.mxu0 %v133_v0  ;;  %v125_v1 = vld [vmem:[%s168_s1] sm:$0xff]   ;;  %119 = vmatprep.mubr.msk.bf16.mxu0 %vm134_vm0, %v133_v0  ;;  %v126_v2 = vld [vmem:[%s168_s1 + $0x8] sm:$0xff]   ;;  %v127_v3 = vld [vmem:[%s168_s1 + $0x10] sm:$0xff]  }
   0x2   :  { %112 = vmatpush3.bf16.msra.mxu0 %v125_v1  ;;  %v128_v4 = vld [vmem:[%s168_s1 + $0x18] sm:$0xff]   ;;  %v12_v5 = vld [vmem:[%s169_s0] sm:$0x1] }
   0x3   :  { %113 = vmatprep.subr.bf16.mxu0 %v133_v0 }
   0x6   :  { %114 = vmatpush3.bf16.msra.mxu0 %v126_v2 }
   0x7   :  { %115 = vmatprep.subr.bf16.mxu0 %v133_v0 }
   0xa   :  { %116 = vmatpush3.bf16.msra.mxu0 %v127_v3 }
   0xb   :  { %117 = vmatprep.subr.bf16.mxu0 %v133_v0 }
   0xe   :  { %118 = vmatpush3.bf16.msra.mxu0 %v128_v4 }
  0x11   :  { %120 = vmatmul.mubr.msk.bf16.vlgmr.msra.gmra.mrb[0].mxu0 %vm45_vm1, %v12_v5 }
  0xe4   :  { %v83_v6 = vpop.f32.mrb[0].mxu0 }
  0xe5   :  { %v105_v7 = vmul.f32 -1.442695, %v83_v6  ;;  %v121_v8 = vpop.f32.mrb[1].mxu0 }
  0xe6   :  { %v86_v9 = vpop.f32.mrb[2].mxu0 }
  0xe7   :  { %129 = vpow2.f32 %v105_v7  ;;  %v122_v10 = vpop.f32.mrb[3].mxu0 }
  0xf1   :  { %v130_v11 = vpop.eup %129 }
  0xf2   :  { %v92_v12 = vadd.f32 1.0, %v130_v11 }
  0xf4   :  { %131 = vrcp.f32 %v92_v12 }
  0xfe   :  { %v132_v13 = vpop.eup %131 }
  0xff   :  { %95 = vst [vmem:[%s170_s2] sm:$0x3] %v132_v13 }

// kernel: discriminator_forward.13
= control target key start
LH: loop header
LB: loop body
LE: loop exit
PB: predicated region body
PF: predicated region fallthrough
CT: control target
= control target key end

     0   :  { %s703_s1 = inlined_call_operand.vmem [shape: bf16[512,128], index: 1, kind: input, shape index: {}]   ;;  %s704_s0 = inlined_call_operand.vmem [shape: bf16[16,512], index: 0, kind: input, shape index: {}]   ;;  %s705_s2 = inlined_call_operand.vmem [shape: bf16[16,128], index: 2, kind: output, shape index: {0}]   ;;  %s706_s3 = inlined_call_operand.vmem [shape: f32[8,128], index: 3, kind: output, shape index: {1}]   ;;  %s707_s4 = inlined_call_operand.vmem [shape: f32[8,128], index: 4, kind: output, shape index: {2}]  }
   0x1   :  { %v523_v0 = vld [vmem:[%s703_s1 + $0x40] sm:$0xff]   ;;  %v527_v4 = vld [vmem:[%s703_s1 + $0x48] sm:$0xff]   ;;  %v531_v8 = vld [vmem:[%s703_s1 + $0x50] sm:$0xff]  }
   0x2   :  { %v524_v1 = vld [vmem:[%s703_s1 + $0xc0] sm:$0xff]   ;;  %479 = vmatprep.subr.bf16.mxu0 %v523_v0  ;;  %v528_v5 = vld [vmem:[%s703_s1 + $0xc8] sm:$0xff]   ;;  %v532_v9 = vld [vmem:[%s703_s1 + $0xd0] sm:$0xff]  }
   0x3   :  { %v525_v2 = vld [vmem:[%s703_s1] sm:$0xff]   ;;  %501 = vmatprep.subr.bf16.mxu1 %v524_v1  ;;  %v529_v6 = vld [vmem:[%s703_s1 + $0x8] sm:$0xff]   ;;  %v533_v10 = vld [vmem:[%s703_s1 + $0x10] sm:$0xff]  }
   0x4   :  { %v526_v3 = vld [vmem:[%s703_s1 + $0x80] sm:$0xff]   ;;  %480 = vmatpush3.bf16.msra.mxu0 %v525_v2  ;;  %v530_v7 = vld [vmem:[%s703_s1 + $0x88] sm:$0xff]   ;;  %v534_v11 = vld [vmem:[%s703_s1 + $0x90] sm:$0xff]  }
   0x5   :  { %502 = vmatpush3.bf16.msra.mxu1 %v526_v3  ;;  %481 = vmatprep.subr.bf16.mxu0 %v527_v4  ;;  %v535_v12 = vld [vmem:[%s703_s1 + $0x58] sm:$0xff]   ;;  %v539_v16 = vld [vmem:[%s703_s1 + $0x60] sm:$0xff]   ;;  %v543_v20 = vld [vmem:[%s703_s1 + $0x68] sm:$0xff]  }
   0x6   :  { %503 = vmatprep.subr.bf16.mxu1 %v528_v5  ;;  %v536_v13 = vld [vmem:[%s703_s1 + $0xd8] sm:$0xff]   ;;  %v540_v17 = vld [vmem:[%s703_s1 + $0xe0] sm:$0xff]   ;;  %v544_v21 = vld [vmem:[%s703_s1 + $0xe8] sm:$0xff]  }
   0x7   :  { %v537_v14 = vld [vmem:[%s703_s1 + $0x18] sm:$0xff]   ;;  %v541_v18 = vld [vmem:[%s703_s1 + $0x20] sm:$0xff]   ;;  %v545_v22 = vld [vmem:[%s703_s1 + $0x28] sm:$0xff]  }
   0x8   :  { %482 = vmatpush3.bf16.msra.mxu0 %v529_v6  ;;  %v538_v15 = vld [vmem:[%s703_s1 + $0x98] sm:$0xff]   ;;  %v542_v19 = vld [vmem:[%s703_s1 + $0xa0] sm:$0xff]   ;;  %v546_v23 = vld [vmem:[%s703_s1 + $0xa8] sm:$0xff]  }
   0x9   :  { %504 = vmatpush3.bf16.msra.mxu1 %v530_v7  ;;  %483 = vmatprep.subr.bf16.mxu0 %v531_v8  ;;  %v547_v24 = vld [vmem:[%s703_s1 + $0x70] sm:$0xff]   ;;  %v551_v28 = vld [vmem:[%s703_s1 + $0x78] sm:$0xff]  }
   0xa   :  { %505 = vmatprep.subr.bf16.mxu1 %v532_v9  ;;  %v548_v25 = vld [vmem:[%s703_s1 + $0xf0] sm:$0xff]   ;;  %v552_v29 = vld [vmem:[%s703_s1 + $0xf8] sm:$0xff]  }
   0xb   :  { %v549_v26 = vld [vmem:[%s703_s1 + $0x30] sm:$0xff]   ;;  %v553_v30 = vld [vmem:[%s703_s1 + $0x38] sm:$0xff]  }
   0xc   :  { %484 = vmatpush3.bf16.msra.mxu0 %v533_v10  ;;  %v550_v27 = vld [vmem:[%s703_s1 + $0xb0] sm:$0xff]   ;;  %v554_v31 = vld [vmem:[%s703_s1 + $0xb8] sm:$0xff]  }
   0xd   :  { %506 = vmatpush3.bf16.msra.mxu1 %v534_v11  ;;  %485 = vmatprep.subr.bf16.mxu0 %v535_v12  ;;  %v555_v32 = vld [vmem:[%s704_s0] ss:$16 sps:$4 sm:$0xff]   ;;  %v557_v33 = vld [vmem:[%s704_s0 + $0x4] ss:$16 sps:$4 sm:$0xff]   ;;  %v558_v34 = vld [vmem:[%s704_s0 + $0x8] ss:$16 sps:$4 sm:$0xff]  }
   0xe   :  { %507 = vmatprep.subr.bf16.mxu1 %v536_v13  ;;  %v560_v35 = vld [vmem:[%s704_s0 + $0xc] ss:$16 sps:$4 sm:$0xff]   ;;  %335 = vmatprep.mubr.bf16.mxu0 %v557_v33 }
   0xf   :  { %376 = vmatprep.mubr.bf16.mxu1 %v560_v35 }
  0x10   :  { %486 = vmatpush3.bf16.msra.mxu0 %v537_v14 }
  0x11   :  { %508 = vmatpush3.bf16.msra.mxu1 %v538_v15  ;;  %487 = vmatprep.subr.bf16.mxu0 %v539_v16 }
  0x12   :  { %509 = vmatprep.subr.bf16.mxu1 %v540_v17 }
  0x14   :  { %488 = vmatpush3.bf16.msra.mxu0 %v541_v18 }
  0x15   :  { %510 = vmatpush3.bf16.msra.mxu1 %v542_v19  ;;  %489 = vmatprep.subr.bf16.mxu0 %v543_v20 }
  0x16   :  { %511 = vmatprep.subr.bf16.mxu1 %v544_v21 }
  0x18   :  { %490 = vmatpush3.bf16.msra.mxu0 %v545_v22 }
  0x19   :  { %512 = vmatpush3.bf16.msra.mxu1 %v546_v23  ;;  %491 = vmatprep.subr.bf16.mxu0 %v547_v24 }
  0x1a   :  { %513 = vmatprep.subr.bf16.mxu1 %v548_v25 }
  0x1c   :  { %492 = vmatpush3.bf16.msra.mxu0 %v549_v26 }
  0x1d   :  { %514 = vmatpush3.bf16.msra.mxu1 %v550_v27  ;;  %493 = vmatprep.subr.bf16.mxu0 %v551_v28 }
  0x1e   :  { %515 = vmatprep.subr.bf16.mxu1 %v552_v29 }
  0x20   :  { %494 = vmatpush3.bf16.msra.mxu0 %v553_v30 }
  0x21   :  { %516 = vmatpush3.bf16.msra.mxu1 %v554_v31 }
  0x23   :  { %336 = vmatmul.mubr.bf16.vlgmr.msra.gmra.mrb[0].mxu0 %v555_v32 }
  0x24   :  { %377 = vmatmul.mubr.bf16.vlgmr.msra.gmra.mrb[0].mxu1 %v558_v34 }
  0xf6   :  { %v495_v36 = vpop.f32.mrb[0].mxu0 }
  0xf7   :  { %v517_v37 = vpop.f32.mrb[0].mxu1  ;;  %v496_v38 = vpop.f32.mrb[1].mxu0 }
  0xf8   :  { %v497_v39 = vadd.f32 %v496_v38, %v495_v36  ;;  %v518_v40 = vpop.f32.mrb[1].mxu1  ;;  %v498_v41 = vpop.f32.mrb[2].mxu0 }
  0xf9   :  { %v519_v42 = vadd.f32 %v518_v40, %v517_v37  ;;  %v520_v43 = vpop.f32.mrb[2].mxu1  ;;  %v499_v44 = vpop.f32.mrb[3].mxu0 }
  0xfa   :  { %v500_v45 = vadd.f32 %v499_v44, %v498_v41  ;;  %v521_v46 = vpop.f32.mrb[3].mxu1 }
  0xfb   :  { %v379_v47 = vadd.f32 %v519_v42, %v497_v39  ;;  %v522_v48 = vadd.f32 %v521_v46, %v520_v43 }
  0xfd   :  { %v382_v49 = vadd.f32 %v522_v48, %v500_v45  ;;  %v412_v50 = vmul.f32 %v379_v47, %v379_v47 }
  0xff   :  { %v477_v51 = vpack.c.bf16 %v382_v49, %v379_v47  ;;  %v404_v52 = vadd.f32 %v382_v49, %v379_v47  ;;  %v413_v53 = vmul.f32 %v382_v49, %v382_v49 }
 0x101   :  { %478 = vst [vmem:[%s705_s2] sm:$0xff] %v477_v51   ;;  %v405_v54 = vrot.slane %v404_v52, 4  ;;  %v414_v55 = vadd.f32 %v413_v53, %v412_v50 }
 0x103   :  { %v406_v56 = vadd.f32 %v405_v54, %v404_v52  ;;  %v415_v57 = vrot.slane %v414_v55, 4 }
 0x105   :  { %v407_v58 = vrot.slane %v406_v56, 2  ;;  %v416_v59 = vadd.f32 %v415_v57, %v414_v55 }
 0x107   :  { %v408_v60 = vadd.f32 %v407_v58, %v406_v56  ;;  %v417_v61 = vrot.slane %v416_v59, 2 }
 0x109   :  { %v409_v62 = vrot.slane %v408_v60, 1  ;;  %v418_v63 = vadd.f32 %v417_v61, %v416_v59 }
 0x10b   :  { %v410_v0 = vadd.f32 %v409_v62, %v408_v60  ;;  %v419_v1 = vrot.slane %v418_v63, 1 }
 0x10d   :  { %411 = vst [vmem:[%s706_s3] sm:$0xff] %v410_v0  ;;  %v420_v2 = vadd.f32 %v419_v1, %v418_v63 }
 0x10f   :  { %421 = vst [vmem:[%s707_s4] sm:$0xff] %v420_v2 }

</bundles_post_ra>
